<compile_context>
chip_gen: v7x
topology: tpu7x:2x2x1
jax: 0.10.0
libtpu: 0.0.40
codegen_flags: <defaults>
</compile_context>

<pallas_src>
import functools

import numpy as np
import jax
import jax.numpy as jnp
from jax.experimental import pallas as pl
from jax.experimental.pallas import tpu as pltpu

_LANE = 128
# Scoped-VMEM budget: 48 MiB is safe on v7x (64 MiB physical) and everywhere else;
# on v5e/v6e (128 MiB physical) this could be raised towards ~96 MiB.
_VMEM_LIMIT = 48 * 1024 * 1024


def _round_up(x, m):
    return ((x + m - 1) // m) * m


def _pick_tile(n, candidates):
    for c in candidates:
        if n % c == 0:
            return c
    return n


def _pad2(x, rows, cols, dtype):
    r, c = x.shape
    return jnp.pad(x, ((0, rows - r), (0, cols - c))).astype(dtype)


def _gcn_tiling(n):
    """Pick (n_pad, tm, tk) for the GCN layer.

    Tiles are sized against the VMEM budget (large tiles amortize the ~0.35us
    per-grid-step overhead and keep DMAs large); N is padded so the tiles
    divide evenly (zero padding of A / H / S is exact).  tm is kept at >= 2 row
    blocks where possible so the 'parallel' axis shards across v7x's 2 TCs.
    """
    n_pad = _round_up(max(n, 8), _LANE)
    if n_pad > 4096:
        n_pad = _round_up(n_pad, 1024)
    elif n_pad > 1024:
        n_pad = _round_up(n_pad, 512)
    tm = _pick_tile(n_pad, (1024, 512, 256, 128))
    tk = _pick_tile(n_pad, (2048, 1024, 512, 256, 128))
    if n_pad // tm < 2 and tm > _LANE:   # v7x: keep >= 2 blocks on the parallel axis
        tm //= 2
    return n_pad, tm, tk


# ----------------------------------------------------------------------------
# GCN layer:  out = relu((A @ H) @ W + b) + relu(H @ W_res + b_res)
# Tiled over (row tiles of A, k tiles of the neighbour reduction); the f32
# scratch holds the running A@H row-tile; W / bias / relu / residual are applied
# only in the finalize block (no per-k H@W recomputation, no per-k casts).
# ----------------------------------------------------------------------------
def _gcn_layer_kernel(a_ref, hk_ref, hi_ref, w_ref, b_ref, wr_ref, br_ref,
                      o_ref, acc_ref):
    k = pl.program_id(1)

    @pl.when(k == 0)
    def _():
        acc_ref[...] = jnp.zeros_like(acc_ref)

    # Accumulate A_tile @ H_k (bf16 x bf16 -> f32) into the resident scratch.
    acc_ref[...] += jnp.dot(a_ref[...], hk_ref[...],
                            preferred_element_type=jnp.float32)

    @pl.when(k == pl.num_programs(1) - 1)
    def _():
        ah = acc_ref[...].astype(jnp.bfloat16)              # one cast per row tile
        conv = jnp.maximum(
            jnp.dot(ah, w_ref[...], preferred_element_type=jnp.float32)
            + b_ref[...], 0.0)                               # GraphConv + relu
        res = jnp.maximum(
            jnp.dot(hi_ref[...], wr_ref[...], preferred_element_type=jnp.float32)
            + br_ref[...], 0.0)                              # residual + relu
        o_ref[...] = (conv + res).astype(o_ref.dtype)


def gcn_layer(a, h, w, b, wr, br, *, tm, tk):
    n_pad = a.shape[0]
    fip = h.shape[1]
    fop = w.shape[1]
    grid = (n_pad // tm, n_pad // tk)
    return pl.pallas_call(
        _gcn_layer_kernel,
        grid=grid,
        in_specs=[
            # A is the only O(N^2) operand; add pipeline_mode=pl.Buffered(3)
            # here if a profile shows its DMA exposed.
            pl.BlockSpec((tm, tk), lambda i, k: (i, k)),     # A tile
            pl.BlockSpec((tk, fip), lambda i, k: (k, 0)),    # H rows (reduction)
            pl.BlockSpec((tm, fip), lambda i, k: (i, 0)),    # H rows (residual)
            pl.BlockSpec((fip, fop), lambda i, k: (0, 0)),   # W
            pl.BlockSpec((1, fop), lambda i, k: (0, 0)),     # b
            pl.BlockSpec((fip, fop), lambda i, k: (0, 0)),   # W_res
            pl.BlockSpec((1, fop), lambda i, k: (0, 0)),     # b_res
        ],
        out_specs=pl.BlockSpec((tm, fop), lambda i, k: (i, 0)),
        out_shape=jax.ShapeDtypeStruct((n_pad, fop), jnp.bfloat16),
        scratch_shapes=[pltpu.VMEM((tm, fip), jnp.float32)],
        compiler_params=pltpu.CompilerParams(
            dimension_semantics=("parallel", "arbitrary"),
            vmem_limit_bytes=_VMEM_LIMIT),
    )(a, h, h, w, b, wr, br)


# ----------------------------------------------------------------------------
# Fused atom-weight + WeightAndSum readout:
#   h_sum = S @ (feats * sigmoid(feats @ w_aw + b_aw))
# One batched (B_pad, N) @ (N, H) matmul, tiled as a reduction over node blocks
# (atom weights computed on the fly per node block; feats never fully resident).
# ----------------------------------------------------------------------------
def _wsum_kernel(s_ref, h_ref, waw_ref, baw_ref, o_ref, acc_ref):
    j = pl.program_id(0)

    @pl.when(j == 0)
    def _():
        acc_ref[...] = jnp.zeros_like(acc_ref)

    f = h_ref[...].astype(jnp.float32)                        # (nt, H)
    # Atom weights on VPU (lane reduce) + EUP (sigmoid): no (H,1) MXU matmul.
    logits = jnp.sum(f * waw_ref[...], axis=-1, keepdims=True) + baw_ref[...]
    aw = jax.nn.sigmoid(logits)                               # (nt, 1)
    wf = (f * aw).astype(jnp.bfloat16)
    acc_ref[...] += jnp.dot(s_ref[...], wf, preferred_element_type=jnp.float32)

    @pl.when(j == pl.num_programs(0) - 1)
    def _():
        o_ref[...] = acc_ref[...]


def weighted_sum_readout(seg_rows, feats, waw_row, baw, *, nt):
    b_pad, n_pad = seg_rows.shape
    hp = feats.shape[1]
    return pl.pallas_call(
        _wsum_kernel,
        grid=(n_pad // nt,),
        in_specs=[
            pl.BlockSpec((b_pad, nt), lambda j: (0, j)),      # S node-block
            pl.BlockSpec((nt, hp), lambda j: (j, 0)),         # feats node-block
            pl.BlockSpec((1, hp), lambda j: (0, 0)),          # w_aw (row form)
            pl.BlockSpec((1, 1), lambda j: (0, 0)),           # b_aw
        ],
        out_specs=pl.BlockSpec((b_pad, hp), lambda j: (0, 0)),
        out_shape=jax.ShapeDtypeStruct((b_pad, hp), jnp.float32),
        scratch_shapes=[pltpu.VMEM((b_pad, hp), jnp.float32)],
        compiler_params=pltpu.CompilerParams(
            dimension_semantics=("arbitrary",),
            vmem_limit_bytes=_VMEM_LIMIT),
    )(seg_rows, feats, waw_row, baw)


# ----------------------------------------------------------------------------
# Per-graph max readout via scalar-prefetched contiguous node-block slices.
# grid = (graphs, node blocks of that graph); the block table / offsets / counts
# live in SMEM (scalar prefetch); invalid rows are masked with jnp.where (no
# additive-mask inf arithmetic, no lane-sparse (N,1) operand).
# ----------------------------------------------------------------------------
def _graph_max_kernel(tbl_ref, off_ref, cnt_ref, feats_ref, o_ref, mx_ref, *, nb):
    b = pl.program_id(0)
    k = pl.program_id(1)

    @pl.when(k == 0)
    def _():
        mx_ref[...] = jnp.full_like(mx_ref, -jnp.inf)

    row0 = tbl_ref[b, k] * nb
    off = off_ref[b]
    cnt = cnt_ref[b]
    rows = row0 + jax.lax.broadcasted_iota(jnp.int32, (nb, 1), 0)
    valid = (rows >= off) & (rows < off + cnt)
    f = feats_ref[...].astype(jnp.float32)
    mx_ref[...] = jnp.maximum(
        mx_ref[...],
        jnp.max(jnp.where(valid, f, -jnp.inf), axis=0, keepdims=True))

    @pl.when(k == pl.num_programs(1) - 1)
    def _():
        o_ref[0] = jnp.where(cnt > 0, mx_ref[...], 0.0)       # empty-graph guard


def graph_max_readout(blk_tbl, offs, cnts, feats, *, nb=_LANE):
    b_pad, kmax = blk_tbl.shape
    n_pad, hp = feats.shape
    kernel = functools.partial(_graph_max_kernel, nb=nb)
    out3 = pl.pallas_call(
        kernel,
        grid_spec=pltpu.PrefetchScalarGridSpec(
            num_scalar_prefetch=3,
            grid=(b_pad, kmax),
            in_specs=[pl.BlockSpec((nb, hp),
                                   lambda b, k, tbl, off, cnt: (tbl[b, k], 0))],
            out_specs=pl.BlockSpec((1, 1, hp),
                                   lambda b, k, tbl, off, cnt: (b, 0, 0)),
            scratch_shapes=[pltpu.VMEM((1, hp), jnp.float32)]),
        out_shape=jax.ShapeDtypeStruct((b_pad, 1, hp), jnp.float32),
        compiler_params=pltpu.CompilerParams(
            dimension_semantics=("parallel", "arbitrary"),
            vmem_limit_bytes=_VMEM_LIMIT),
    )(blk_tbl, offs, cnts, feats)
    return out3[:, 0, :]


# ----------------------------------------------------------------------------
# Parameter init (deterministic, synthetic) and full forward
# ----------------------------------------------------------------------------
def init_params(key, node_in_feats, gnn_hidden_feats, n_tasks):
    params = {"gcn_layers": []}
    in_f = node_in_feats
    keys = iter(jax.random.split(key, 4 * len(gnn_hidden_feats) + 4))
    for out_f in gnn_hidden_feats:
        scale = 1.0 / np.sqrt(in_f)
        w = jax.random.normal(next(keys), (in_f, out_f), jnp.float32) * scale
        b = jax.random.normal(next(keys), (1, out_f), jnp.float32) * scale
        wr = jax.random.normal(next(keys), (in_f, out_f), jnp.float32) * scale
        br = jax.random.normal(next(keys), (1, out_f), jnp.float32) * scale
        params["gcn_layers"].append((w, b, wr, br))
        in_f = out_f
    h = gnn_hidden_feats[-1]
    g_feats = 2 * h
    params["waw"] = jax.random.normal(next(keys), (h, 1), jnp.float32) / np.sqrt(h)
    params["baw"] = jnp.zeros((1, 1), jnp.float32)
    params["wt"] = jax.random.normal(next(keys), (g_feats, n_tasks),
                                     jnp.float32) / np.sqrt(g_feats)
    params["bt"] = jnp.zeros((1, n_tasks), jnp.float32)
    return params


def gnn_multitask_forward(params, adj, node_feats, seg, *, relu=False,
                          normalization=False):
    n = node_feats.shape[0]
    bsz = seg.shape[0]

    n_pad, tm, tk = _gcn_tiling(n)

    # bf16 adjacency (0/1 is exact) halves the O(N^2) HBM traffic / VMEM footprint.
    # Padded A rows/cols and S cols are exactly zero, so padded-node garbage
    # (relu(b)+relu(b_res)) never reaches real nodes or the readouts.
    a_p = _pad2(adj, n_pad, n_pad, jnp.bfloat16)

    fi = node_feats.shape[1]
    h_p = _pad2(node_feats, n_pad, _round_up(fi, _LANE), jnp.bfloat16)

    for (w, bb, wr, br) in params["gcn_layers"]:
        in_f, out_f = w.shape
        fip = _round_up(in_f, _LANE)
        fop = _round_up(out_f, _LANE)
        w_p = _pad2(w, fip, fop, jnp.bfloat16)
        wr_p = _pad2(wr, fip, fop, jnp.bfloat16)
        b_p = _pad2(bb, 1, fop, jnp.float32)
        br_p = _pad2(br, 1, fop, jnp.float32)
        h_p = gcn_layer(a_p, h_p, w_p, b_p, wr_p, br_p, tm=tm, tk=tk)

    hid = params["gcn_layers"][-1][0].shape[1]
    hp = _round_up(hid, _LANE)

    # Host-side graph metadata (DGL batches graphs as contiguous, ordered node
    # blocks, so offsets = cumsum of per-graph node counts == batch_num_nodes).
    seg_np = np.asarray(seg)
    cnts_np = seg_np.sum(axis=1).astype(np.int32)
    offs_np = np.concatenate([[0], np.cumsum(cnts_np)[:-1]]).astype(np.int32)

    b_pad = _round_up(max(bsz, 8), 8)
    nb = _LANE
    nblk_tot = n_pad // nb
    spans = np.where(cnts_np > 0,
                     (offs_np + np.maximum(cnts_np, 1) - 1) // nb
                     - offs_np // nb + 1, 1)
    kmax = int(max(1, spans.max())) if bsz > 0 else 1
    blk_tbl_np = np.zeros((b_pad, kmax), np.int32)
    for g in range(bsz):
        blk_tbl_np[g] = np.minimum(offs_np[g] // nb + np.arange(kmax), nblk_tot - 1)
    offs_p = np.zeros((b_pad,), np.int32); offs_p[:bsz] = offs_np
    cnts_p = np.zeros((b_pad,), np.int32); cnts_p[:bsz] = cnts_np

    seg_rows = _pad2(seg, b_pad, n_pad, jnp.bfloat16)
    waw_row = _pad2(params["waw"].reshape(1, -1), 1, hp, jnp.float32)
    baw = params["baw"].astype(jnp.float32)

    nt = _pick_tile(n_pad, (512, 256, 128))
    h_sum = weighted_sum_readout(seg_rows, h_p, waw_row, baw, nt=nt)   # (B_pad, hp)
    h_max = graph_max_readout(jnp.asarray(blk_tbl_np), jnp.asarray(offs_p),
                              jnp.asarray(cnts_p), h_p, nb=nb)         # (B_pad, hp)

    # Tiny (B, 2H) tail: relu / normalization / task head done once in XLA
    # (lane-dense Pallas stores would be wasted on an n_tasks-wide output).
    h_g = jnp.concatenate([h_sum[:bsz, :hid], h_max[:bsz, :hid]], axis=1)
    if relu:
        h_g = jnp.maximum(h_g, 0.0)
    if normalization:
        # Matches torch: h_g.T / norm(h_g, dim=1) (no eps clamp).
        h_g = h_g / jnp.linalg.norm(h_g, axis=1, keepdims=True)
    out = h_g @ params["wt"] + params["bt"]
    return out, h_g   # matches PyTorch (output, h_g) when task is given


# ----------------------------------------------------------------------------
def _build_batched_graph(num_graphs, nodes_per_graph):
    """Block-diagonal ring graphs with self-loops + one-hot graph membership."""
    n = num_graphs * nodes_per_graph
    a = np.zeros((n, n), np.float32)
    s = np.zeros((num_graphs, n), np.float32)
    for g in range(num_graphs):
        base = g * nodes_per_graph
        for i in range(nodes_per_graph):
            s[g, base + i] = 1.0
            a[base + i, base + i] = 1.0              # self-loop
            j = base + (i + 1) % nodes_per_graph     # ring edges (both directions)
            a[j, base + i] = 1.0
            a[base + i, j] = 1.0
    return jnp.asarray(a), jnp.asarray(s)


if __name__ == "__main__":
    # small, module-consistent shapes
    node_in_feats = 8
    gnn_hidden_feats = [32, 32]       # two GCN layers
    n_tasks = {"delaney": 1}
    num_graphs = 4                    # B (molecules per batch)
    nodes_per_graph = 4               # N = 16 total nodes

    key = jax.random.PRNGKey(0)
    k_feat, k_param = jax.random.split(key)

    adj, seg = _build_batched_graph(num_graphs, nodes_per_graph)
    node_feats = jax.random.normal(
        k_feat, (num_graphs * nodes_per_graph, node_in_feats), jnp.float32)

    params = init_params(k_param, node_in_feats, gnn_hidden_feats,
                         n_tasks["delaney"])

    out, h_g = gnn_multitask_forward(params, adj, node_feats, seg,
                                     relu=False, normalization=False)
    jax.block_until_ready((out, h_g))

    assert out.shape == (num_graphs, n_tasks["delaney"])
    assert h_g.shape == (num_graphs, 2 * gnn_hidden_feats[-1])
    assert bool(jnp.all(jnp.isfinite(out))) and bool(jnp.all(jnp.isfinite(h_g)))
    print("KERNEL_OK")
</pallas_src>

<mosaic_0001>
module attributes {stable_mosaic.version = 11 : i64} {
  func.func @_gcn_layer_kernel(%arg0: i32, %arg1: i32, %arg2: memref<128x128xbf16, #tpu.memory_space<vmem>>, %arg3: memref<128x128xbf16, #tpu.memory_space<vmem>>, %arg4: memref<128x128xbf16, #tpu.memory_space<vmem>>, %arg5: memref<128x128xbf16, #tpu.memory_space<vmem>>, %arg6: memref<1x128xf32, #tpu.memory_space<vmem>>, %arg7: memref<128x128xbf16, #tpu.memory_space<vmem>>, %arg8: memref<1x128xf32, #tpu.memory_space<vmem>>, %arg9: memref<128x128xbf16, #tpu.memory_space<vmem>>, %arg10: memref<128x128xf32, #tpu.memory_space<vmem>>) attributes {dimension_semantics = [#tpu.dimension_semantics<parallel>, #tpu.dimension_semantics<arbitrary>], iteration_bounds = array<i64: 1, 1>, scalar_prefetch = 0 : i64, scratch_operands = 1 : i64, tpu.core_type = #tpu.core_type<tc>, window_params = [{transform_indices = @transform_0, window_bounds = array<i64: 128, 128>}, {transform_indices = @transform_1, window_bounds = array<i64: 128, 128>}, {transform_indices = @transform_2, window_bounds = array<i64: 128, 128>}, {pipeline_mode = #tpu.pipeline_mode<synchronous>, transform_indices = @transform_3, window_bounds = array<i64: 128, 128>}, {pipeline_mode = #tpu.pipeline_mode<synchronous>, transform_indices = @transform_4, window_bounds = array<i64: 1, 128>}, {pipeline_mode = #tpu.pipeline_mode<synchronous>, transform_indices = @transform_5, window_bounds = array<i64: 128, 128>}, {pipeline_mode = #tpu.pipeline_mode<synchronous>, transform_indices = @transform_6, window_bounds = array<i64: 1, 128>}, {transform_indices = @transform_7, window_bounds = array<i64: 128, 128>}]} {
    %c0_i32 = arith.constant 0 : i32
    %0 = arith.cmpi eq, %arg1, %c0_i32 : i32
    %1 = arith.extui %0 : i1 to i32
    %c0_i32_0 = arith.constant 0 : i32
    %2 = arith.cmpi ne, %1, %c0_i32_0 : i32
    scf.if %2 {
      %cst_10 = arith.constant 0.000000e+00 : f32
      %12 = vector.broadcast %cst_10 : f32 to vector<128x128xf32>
      %c0_11 = arith.constant 0 : index
      %c0_12 = arith.constant 0 : index
      %13 = vector.load %arg10[%c0_11, %c0_12] : memref<128x128xf32, #tpu.memory_space<vmem>>, vector<128x128xf32>
      tpu.vector_store %arg10[%c0_11, %c0_12], %12 {strides = array<i32>} : memref<128x128xf32, #tpu.memory_space<vmem>>, vector<128x128xf32>,
    } else {
    }
    %c0 = arith.constant 0 : index
    %c0_1 = arith.constant 0 : index
    %3 = vector.load %arg10[%c0, %c0_1] : memref<128x128xf32, #tpu.memory_space<vmem>>, vector<128x128xf32>
    %c0_2 = arith.constant 0 : index
    %c0_3 = arith.constant 0 : index
    %4 = vector.load %arg2[%c0_2, %c0_3] : memref<128x128xbf16, #tpu.memory_space<vmem>>, vector<128x128xbf16>
    %c0_4 = arith.constant 0 : index
    %c0_5 = arith.constant 0 : index
    %5 = vector.load %arg3[%c0_4, %c0_5] : memref<128x128xbf16, #tpu.memory_space<vmem>>, vector<128x128xbf16>
    %cst = arith.constant dense<0.000000e+00> : vector<128x128xf32>
    %6 = tpu.matmul %4, %5, %cst {dimension_numbers = #tpu.dot_dimension_numbers<[1], [0], [0], [1], [0, 0, 1, 1], [], []>} : vector<128x128xbf16>, vector<128x128xbf16>, vector<128x128xf32> -> vector<128x128xf32>
    %7 = arith.addf %3, %6 : vector<128x128xf32>
    %c0_6 = arith.constant 0 : index
    %c0_7 = arith.constant 0 : index
    %8 = vector.load %arg10[%c0_6, %c0_7] : memref<128x128xf32, #tpu.memory_space<vmem>>, vector<128x128xf32>
    tpu.vector_store %arg10[%c0_6, %c0_7], %7 {strides = array<i32>} : memref<128x128xf32, #tpu.memory_space<vmem>>, vector<128x128xf32>,
    %c0_i32_8 = arith.constant 0 : i32
    %9 = arith.cmpi eq, %arg1, %c0_i32_8 : i32
    %10 = arith.extui %9 : i1 to i32
    %c0_i32_9 = arith.constant 0 : i32
    %11 = arith.cmpi ne, %10, %c0_i32_9 : i32
    scf.if %11 {
      %c0_10 = arith.constant 0 : index
      %c0_11 = arith.constant 0 : index
      %12 = vector.load %arg10[%c0_10, %c0_11] : memref<128x128xf32, #tpu.memory_space<vmem>>, vector<128x128xf32>
      %13 = arith.truncf %12 : vector<128x128xf32> to vector<128x128xbf16>
      %c0_12 = arith.constant 0 : index
      %c0_13 = arith.constant 0 : index
      %14 = vector.load %arg5[%c0_12, %c0_13] : memref<128x128xbf16, #tpu.memory_space<vmem>>, vector<128x128xbf16>
      %cst_14 = arith.constant dense<0.000000e+00> : vector<128x128xf32>
      %15 = tpu.matmul %13, %14, %cst_14 {dimension_numbers = #tpu.dot_dimension_numbers<[1], [0], [0], [1], [0, 0, 1, 1], [], []>} : vector<128x128xbf16>, vector<128x128xbf16>, vector<128x128xf32> -> vector<128x128xf32>
      %c0_15 = arith.constant 0 : index
      %c0_16 = arith.constant 0 : index
      %16 = vector.load %arg6[%c0_15, %c0_16] : memref<1x128xf32, #tpu.memory_space<vmem>>, vector<1x128xf32>
      %17 = vector.broadcast %16 : vector<1x128xf32> to vector<128x128xf32>
      %18 = arith.addf %15, %17 : vector<128x128xf32>
      %cst_17 = arith.constant 0.000000e+00 : f32
      %19 = vector.broadcast %cst_17 : f32 to vector<128x128xf32>
      %20 = arith.maximumf %18, %19 : vector<128x128xf32>
      %c0_18 = arith.constant 0 : index
      %c0_19 = arith.constant 0 : index
      %21 = vector.load %arg4[%c0_18, %c0_19] : memref<128x128xbf16, #tpu.memory_space<vmem>>, vector<128x128xbf16>
      %c0_20 = arith.constant 0 : index
      %c0_21 = arith.constant 0 : index
      %22 = vector.load %arg7[%c0_20, %c0_21] : memref<128x128xbf16, #tpu.memory_space<vmem>>, vector<128x128xbf16>
      %cst_22 = arith.constant dense<0.000000e+00> : vector<128x128xf32>
      %23 = tpu.matmul %21, %22, %cst_22 {dimension_numbers = #tpu.dot_dimension_numbers<[1], [0], [0], [1], [0, 0, 1, 1], [], []>} : vector<128x128xbf16>, vector<128x128xbf16>, vector<128x128xf32> -> vector<128x128xf32>
      %c0_23 = arith.constant 0 : index
      %c0_24 = arith.constant 0 : index
      %24 = vector.load %arg8[%c0_23, %c0_24] : memref<1x128xf32, #tpu.memory_space<vmem>>, vector<1x128xf32>
      %25 = vector.broadcast %24 : vector<1x128xf32> to vector<128x128xf32>
      %26 = arith.addf %23, %25 : vector<128x128xf32>
      %cst_25 = arith.constant 0.000000e+00 : f32
      %27 = vector.broadcast %cst_25 : f32 to vector<128x128xf32>
      %28 = arith.maximumf %26, %27 : vector<128x128xf32>
      %29 = arith.addf %20, %28 : vector<128x128xf32>
      %30 = arith.truncf %29 : vector<128x128xf32> to vector<128x128xbf16>
      %c0_26 = arith.constant 0 : index
      %c0_27 = arith.constant 0 : index
      %31 = vector.load %arg9[%c0_26, %c0_27] : memref<128x128xbf16, #tpu.memory_space<vmem>>, vector<128x128xbf16>
      tpu.vector_store %arg9[%c0_26, %c0_27], %30 {strides = array<i32>} : memref<128x128xbf16, #tpu.memory_space<vmem>>, vector<128x128xbf16>,
    } else {
    }
    return
  }
  func.func @transform_0(%arg0: i32, %arg1: i32) -> (i32, i32) {
    %c0_i32 = arith.constant 0 : i32
    return %arg0, %arg1 : i32, i32
  }
  func.func @transform_1(%arg0: i32, %arg1: i32) -> (i32, i32) {
    %c0_i32 = arith.constant 0 : i32
    %c0_i32_0 = arith.constant 0 : i32
    return %arg1, %c0_i32 : i32, i32
  }
  func.func @transform_2(%arg0: i32, %arg1: i32) -> (i32, i32) {
    %c0_i32 = arith.constant 0 : i32
    %c0_i32_0 = arith.constant 0 : i32
    return %arg0, %c0_i32 : i32, i32
  }
  func.func @transform_3(%arg0: i32, %arg1: i32) -> (i32, i32) {
    %c0_i32 = arith.constant 0 : i32
    %c0_i32_0 = arith.constant 0 : i32
    %c0_i32_1 = arith.constant 0 : i32
    return %c0_i32, %c0_i32_0 : i32, i32
  }
  func.func @transform_4(%arg0: i32, %arg1: i32) -> (i32, i32) {
    %c0_i32 = arith.constant 0 : i32
    %c0_i32_0 = arith.constant 0 : i32
    %c0_i32_1 = arith.constant 0 : i32
    return %c0_i32, %c0_i32_0 : i32, i32
  }
  func.func @transform_5(%arg0: i32, %arg1: i32) -> (i32, i32) {
    %c0_i32 = arith.constant 0 : i32
    %c0_i32_0 = arith.constant 0 : i32
    %c0_i32_1 = arith.constant 0 : i32
    return %c0_i32, %c0_i32_0 : i32, i32
  }
  func.func @transform_6(%arg0: i32, %arg1: i32) -> (i32, i32) {
    %c0_i32 = arith.constant 0 : i32
    %c0_i32_0 = arith.constant 0 : i32
    %c0_i32_1 = arith.constant 0 : i32
    return %c0_i32, %c0_i32_0 : i32, i32
  }
  func.func @transform_7(%arg0: i32, %arg1: i32) -> (i32, i32) {
    %c0_i32 = arith.constant 0 : i32
    %c0_i32_0 = arith.constant 0 : i32
    return %arg0, %c0_i32 : i32, i32
  }
}

</mosaic_0001>

<bundles_post_ra>
// kernel: tpu_custom_call.1
= control target key start
LH: loop header
LB: loop body
LE: loop exit
PB: predicated region body
PF: predicated region fallthrough
CT: control target
= control target key end

     0   :  { %12 = vsyncpa [#allocation4], 0  ;;  %s1668_s0 = inlined_call_operand.hbm [shape: bf16[128,128], index: 0, kind: input, shape index: {}]   ;;  %s1669_s1 = inlined_call_operand.hbm [shape: bf16[128,128], index: 1, kind: input, shape index: {}]   ;;  %s1670_s2 = inlined_call_operand.hbm [shape: bf16[128,128], index: 2, kind: input, shape index: {}]   ;;  %s1671_s3 = inlined_call_operand.hbm [shape: bf16[128,128], index: 3, kind: input, shape index: {}]   ;;  %s1672_s4 = inlined_call_operand.vmem [shape: f32[1,128], index: 4, kind: input, shape index: {}]   ;;  %s1673_s5 = inlined_call_operand.hbm [shape: bf16[128,128], index: 5, kind: input, shape index: {}]   ;;  %s1674_s6 = inlined_call_operand.vmem [shape: f32[1,128], index: 6, kind: input, shape index: {}]   ;;  %s1675_s7 = inlined_call_operand.hbm [shape: bf16[128,128], index: 7, kind: output, shape index: {}]  }
   0x1   :  { %13 = vsyncpa [#allocation7], 0 }
   0x2   :  { %14 = vsyncpa [#allocation10], 0 }
   0x3   :  { %15 = vsyncpa [#allocation5], 0  ;;  %s1432_s24 = smov [#allocation6]   ;;  %s1433_s26 = smov [#allocation9]  }
   0x4   :  { %s33_s25 = sshll.u32 %s1432_s24, 4  ;;  %s57_s27 = sshll.u32 %s1433_s26, 4  ;;  %s34_s25 = int_to_ptr.vmem [resolvable:$true] %s33_s25  ;;  %s1480_s27 = int_to_ptr.vmem [resolvable:$true] %s57_s27 }
   0x5   :  { %s1292_s30 = scalar_lea.hbm %s1669_s1, 1024 }
   0x6   :  { %p1293_p0 = scmp.ne.s32.totalorder %s1669_s1, %s1292_s30  ;;  %p1296_p1 = scmp.lt.u32.totalorder %s1292_s30, %s1669_s1 }
   0x8   :  { %p1298_p2 = pnand %p1296_p1, %p1293_p0 }
   0xa   :  { %1301 = shalt.err (!%p1298_p2)
}
   0xb   :  { %s1302_s12 = scalar_lea.vmem %s34_s25, 1024  ;;  %p1307_p4 = scmp.lt.s32.totalorder %s34_s25, %s34_s25 }
   0xc   :  { %p1303_p3 = scmp.ne.s32.totalorder %s34_s25, %s1302_s12  ;;  %p1308_p5 = scmp.lt.s32.totalorder %s1302_s12, %s1302_s12 }
   0xe   :  { %p1309_p6 = por %p1308_p5, %p1307_p4 }
  0x10   :  { %p1310_p7 = pnand %p1309_p6, %p1303_p3 }
  0x12   :  { %1313 = shalt.err (!%p1310_p7)
}
  0x13   :  { %s1434_s13 = smov 64   ;;  %s1435_s14 = smov 4  }
  0x14   :  { %39 = dma.hbm_to_vmem [thread:$0]  %s1669_s1, 1024, %s34_s25, [#allocation7], %s1434_s13, %s1434_s13, %s1435_s14  }
  0x15   :  { %s1314_s19 = scalar_lea.hbm %s1671_s3, 1024 }
  0x16   :  { %p1315_p8 = scmp.ne.s32.totalorder %s1671_s3, %s1314_s19  ;;  %p1318_p9 = scmp.lt.u32.totalorder %s1314_s19, %s1671_s3 }
  0x18   :  { %p1320_p10 = pnand %p1318_p9, %p1315_p8 }
  0x1a   :  { %1323 = shalt.err (!%p1320_p10)
}
  0x1b   :  { %s1324_s24 = scalar_lea.vmem %s1480_s27, 1024  ;;  %p1329_p12 = scmp.lt.s32.totalorder %s1480_s27, %s1480_s27 }
  0x1c   :  { %p1325_p11 = scmp.ne.s32.totalorder %s1480_s27, %s1324_s24  ;;  %p1330_p13 = scmp.lt.s32.totalorder %s1324_s24, %s1324_s24 }
  0x1e   :  { %p1331_p0 = por %p1330_p13, %p1329_p12 }
  0x20   :  { %p1332_p1 = pnand %p1331_p0, %p1325_p11 }
  0x22   :  { %1335 = shalt.err (!%p1332_p1)
}
  0x23   :  { %63 = dma.hbm_to_vmem [thread:$0]  %s1671_s3, 1024, %s1480_s27, [#allocation10], %s1434_s13, %s1434_s13, %s1435_s14  }
  0x24   :  { %s1436_s26 = smov [#allocation3]   ;;  %s1437_s29 = smov [#allocation8]  }
  0x25   :  { %s21_s28 = sshll.u32 %s1436_s26, 4  ;;  %s45_s30 = sshll.u32 %s1437_s29, 4  ;;  %s22_s28 = int_to_ptr.vmem [resolvable:$true] %s21_s28  ;;  %s1517_s30 = int_to_ptr.vmem [resolvable:$true] %s45_s30 }
  0x26   :  { %s1336_s10 = scalar_lea.hbm %s1668_s0, 1024 }
  0x27   :  { %p1337_p2 = scmp.ne.s32.totalorder %s1668_s0, %s1336_s10  ;;  %p1340_p3 = scmp.lt.u32.totalorder %s1336_s10, %s1668_s0 }
  0x29   :  { %p1342_p4 = pnand %p1340_p3, %p1337_p2 }
  0x2b   :  { %1345 = shalt.err (!%p1342_p4)
}
  0x2c   :  { %s1346_s3 = scalar_lea.vmem %s22_s28, 1024  ;;  %p1351_p6 = scmp.lt.s32.totalorder %s22_s28, %s22_s28 }
  0x2d   :  { %p1347_p5 = scmp.ne.s32.totalorder %s22_s28, %s1346_s3  ;;  %p1352_p7 = scmp.lt.s32.totalorder %s1346_s3, %s1346_s3 }
  0x2f   :  { %p1353_p8 = por %p1352_p7, %p1351_p6 }
  0x31   :  { %p1354_p9 = pnand %p1353_p8, %p1347_p5 }
  0x33   :  { %1357 = shalt.err (!%p1354_p9)
}
  0x34   :  { %27 = dma.hbm_to_vmem [thread:$0]  %s1668_s0, 1024, %s22_s28, [#allocation4], %s1434_s13, %s1434_s13, %s1435_s14  }
  0x35   :  { %s1358_s20 = scalar_lea.hbm %s1670_s2, 1024 }
  0x36   :  { %p1359_p10 = scmp.ne.s32.totalorder %s1670_s2, %s1358_s20  ;;  %p1362_p11 = scmp.lt.u32.totalorder %s1358_s20, %s1670_s2 }
  0x38   :  { %p1364_p12 = pnand %p1362_p11, %p1359_p10 }
  0x3a   :  { %1367 = shalt.err (!%p1364_p12)
}
  0x3b   :  { %s1368_s1 = scalar_lea.vmem %s1517_s30, 1024  ;;  %p1373_p0 = scmp.lt.s32.totalorder %s1517_s30, %s1517_s30 }
  0x3c   :  { %p1369_p13 = scmp.ne.s32.totalorder %s1517_s30, %s1368_s1  ;;  %p1374_p1 = scmp.lt.s32.totalorder %s1368_s1, %s1368_s1 }
  0x3e   :  { %p1375_p2 = por %p1374_p1, %p1373_p0 }
  0x40   :  { %p1376_p3 = pnand %p1375_p2, %p1369_p13 }
  0x42   :  { %1379 = shalt.err (!%p1376_p3)
}
  0x43   :  { %51 = dma.hbm_to_vmem [thread:$0]  %s1670_s2, 1024, %s1517_s30, [#allocation7], %s1434_s13, %s1434_s13, %s1435_s14  }
  0x44   :  { %s1438_s26 = smov [#allocation11]   ;;  %s1380_s9 = scalar_lea.hbm %s1673_s5, 1024 }
  0x45   :  { %s71_s28 = sshll.u32 %s1438_s26, 4  ;;  %p1381_p4 = scmp.ne.s32.totalorder %s1673_s5, %s1380_s9  ;;  %s72_s28 = int_to_ptr.vmem [resolvable:$true] %s71_s28 }
  0x46   :  { %p1384_p5 = scmp.lt.u32.totalorder %s1380_s9, %s1673_s5 }
  0x48   :  { %p1386_p6 = pnand %p1384_p5, %p1381_p4 }
  0x4a   :  { %1389 = shalt.err (!%p1386_p6)
}
  0x4b   :  { %s1390_s16 = scalar_lea.vmem %s72_s28, 1024  ;;  %p1395_p8 = scmp.lt.s32.totalorder %s72_s28, %s72_s28 }
  0x4c   :  { %p1391_p7 = scmp.ne.s32.totalorder %s72_s28, %s1390_s16  ;;  %p1396_p9 = scmp.lt.s32.totalorder %s1390_s16, %s1390_s16 }
  0x4e   :  { %p1397_p10 = por %p1396_p9, %p1395_p8 }
  0x50   :  { %p1398_p11 = pnand %p1397_p10, %p1391_p7 }
  0x52   :  { %1401 = shalt.err (!%p1398_p11)
}
  0x53   :  { %77 = dma.hbm_to_vmem [thread:$0]  %s1673_s5, 1024, %s72_s28, [#allocation10], %s1434_s13, %s1434_s13, %s1435_s14  }
  0x54   :  { %1424 = dma.done.wait [#allocation4], 1024  }
  0x55   :  { %1425 = vsyncadd [#allocation4], 4294966272 }
  0x56   :  { %1426 = dma.done.wait [#allocation7], 2048  }
  0x57   :  { %1427 = vsyncadd [#allocation7], 4294965248 }
  0x58   :  { %1428 = dma.done.wait [#allocation10], 2048  }
  0x59   :  { %1429 = vsyncadd [#allocation10], 4294965248  ;;  %v1252_v0 = vld [vmem:[#allocation6] sm:$0xff]   ;;  %v1253_v1 = vld [vmem:[#allocation6 + $0x8] sm:$0xff]  }
  0x5a   :  { %1132 = vmatprep.subr.bf16.mxu0 %v1252_v0  ;;  %v1254_v2 = vld [vmem:[#allocation6 + $0x10] sm:$0xff]   ;;  %v1255_v3 = vld [vmem:[#allocation6 + $0x18] sm:$0xff]   ;;  %v1260_v4 = vld [vmem:[#allocation3] sm:$0xff]  }
  0x5b   :  { %1133 = vmatpush3.bf16.msra.mxu0 %v1252_v0  ;;  %1148 = vmatprep.mubr.bf16.mxu0 %v1260_v4  ;;  %v1256_v5 = vld [vmem:[#allocation6 + $0x20] sm:$0xff]   ;;  %v1257_v6 = vld [vmem:[#allocation6 + $0x28] sm:$0xff]   ;;  %v1258_v9 = vld [vmem:[#allocation6 + $0x30] sm:$0xff]  }
  0x5c   :  { %1134 = vmatprep.subr.bf16.mxu0 %v1253_v1  ;;  %v1268_v7 = vld [vmem:[#allocation9] sm:$0xff]   ;;  %v1270_v8 = vld [vmem:[#allocation9 + $0x8] sm:$0xff]   ;;  %v1272_v10 = vld [vmem:[#allocation9 + $0x10] sm:$0xff]  }
  0x5d   :  { %1164 = vmatprep.subr.bf16.mxu1 %v1268_v7  ;;  %v1259_v11 = vld [vmem:[#allocation6 + $0x38] sm:$0xff]   ;;  %v1569_v13 = vld [vmem:[#allocation11] sm:$0xff]   ;;  %v1261_v14 = vld [vmem:[#allocation3 + $0x8] sm:$0xff]  }
  0x5e   :  { %1165 = vmatpush3.bf16.msra.mxu1 %v1268_v7  ;;  %v1274_v12 = vld [vmem:[#allocation9 + $0x18] sm:$0xff]   ;;  %v1276_v15 = vld [vmem:[#allocation9 + $0x20] sm:$0xff]   ;;  %v1262_v16 = vld [vmem:[#allocation3 + $0x10] sm:$0xff]  }
  0x5f   :  { %1135 = vmatpush3.bf16.msra.mxu0 %v1253_v1  ;;  %1166 = vmatprep.subr.bf16.mxu1 %v1270_v8  ;;  %v1571_v17 = vld [vmem:[#allocation11 + $0x8] sm:$0xff]   ;;  %v1576_v19 = vld [vmem:[#allocation11 + $0x10] sm:$0xff]   ;;  %v1263_v21 = vld [vmem:[#allocation3 + $0x18] sm:$0xff]  }
  0x60   :  { %1136 = vmatprep.subr.bf16.mxu0 %v1254_v2  ;;  %v1278_v18 = vld [vmem:[#allocation9 + $0x28] sm:$0xff]   ;;  %v1280_v20 = vld [vmem:[#allocation9 + $0x30] sm:$0xff]   ;;  %v1264_v22 = vld [vmem:[#allocation3 + $0x20] sm:$0xff]  }
  0x61   :  { %v1580_v23 = vld [vmem:[#allocation11 + $0x18] sm:$0xff]   ;;  %v1584_v24 = vld [vmem:[#allocation11 + $0x20] sm:$0xff]   ;;  %v1265_v25 = vld [vmem:[#allocation3 + $0x28] sm:$0xff]  }
  0x62   :  { %1167 = vmatpush3.bf16.msra.mxu1 %v1270_v8  ;;  %v1266_v26 = vld [vmem:[#allocation3 + $0x30] sm:$0xff]   ;;  %v1588_v27 = vld [vmem:[#allocation11 + $0x28] sm:$0xff]   ;;  %v1267_v29 = vld [vmem:[#allocation3 + $0x38] sm:$0xff]  }
  0x63   :  { %1137 = vmatpush3.bf16.msra.mxu0 %v1254_v2  ;;  %1168 = vmatprep.subr.bf16.mxu1 %v1272_v10  ;;  %v1592_v28 = vld [vmem:[#allocation11 + $0x30] sm:$0xff]   ;;  %v1282_v30 = vld [vmem:[#allocation9 + $0x38] sm:$0xff]   ;;  %v1284_v32 = vld [vmem:[#allocation8] sm:$0xff]  }
  0x64   :  { %1138 = vmatprep.subr.bf16.mxu0 %v1255_v3  ;;  %v1283_v31 = vld [vmem:[#allocation11 + $0x38] sm:$0xff]   ;;  %v1285_v33 = vld [vmem:[#allocation8 + $0x8] sm:$0xff]   ;;  %v1286_v34 = vld [vmem:[#allocation8 + $0x10] sm:$0xff]  }
  0x65   :  { %v1287_v35 = vld [vmem:[#allocation8 + $0x18] sm:$0xff]   ;;  %v1288_v60 = vld [vmem:[#allocation8 + $0x20] sm:$0xff]   ;;  %v1289_v61 = vld [vmem:[#allocation8 + $0x28] sm:$0xff]  }
  0x66   :  { %1169 = vmatpush3.bf16.msra.mxu1 %v1272_v10  ;;  %v1290_v62 = vld [vmem:[#allocation8 + $0x30] sm:$0xff]   ;;  %v1291_v63 = vld [vmem:[#allocation8 + $0x38] sm:$0xff]   ;;  %v1614_v8 = vld [vmem:[%s1674_s6] ss:$0 sm:$0xff] }
  0x67   :  { %1139 = vmatpush3.bf16.msra.mxu0 %v1255_v3  ;;  %1170 = vmatprep.subr.bf16.mxu1 %v1274_v12  ;;  %v1620_v10 = vld [vmem:[%s1672_s4] ss:$0 sm:$0xff]  ;;  %s1439_s4 = smov [#allocation12]  }
  0x68   :  { %1140 = vmatprep.subr.bf16.mxu0 %v1256_v5  ;;  %s949_s6 = sshll.u32 %s1439_s4, 4  ;;  %s950_s6 = int_to_ptr.vmem [resolvable:$true] %s949_s6 }
  0x69   :  { %s1402_s18 = scalar_lea.vmem %s950_s6, 1024  ;;  %p1407_p13 = scmp.lt.s32.totalorder %s950_s6, %s950_s6 }
  0x6a   :  { %1171 = vmatpush3.bf16.msra.mxu1 %v1274_v12  ;;  %p1403_p12 = scmp.ne.s32.totalorder %s950_s6, %s1402_s18  ;;  %p1408_p0 = scmp.lt.s32.totalorder %s1402_s18, %s1402_s18 }
  0x6b   :  { %1141 = vmatpush3.bf16.msra.mxu0 %v1256_v5  ;;  %1172 = vmatprep.subr.bf16.mxu1 %v1276_v15 }
  0x6c   :  { %1142 = vmatprep.subr.bf16.mxu0 %v1257_v6  ;;  %p1409_p1 = por %p1408_p0, %p1407_p13 }
  0x6e   :  { %1173 = vmatpush3.bf16.msra.mxu1 %v1276_v15  ;;  %p1410_p2 = pnand %p1409_p1, %p1403_p12 }
  0x6f   :  { %1143 = vmatpush3.bf16.msra.mxu0 %v1257_v6  ;;  %1174 = vmatprep.subr.bf16.mxu1 %v1278_v18 }
  0x70   :  { %1144 = vmatprep.subr.bf16.mxu0 %v1258_v9 }
  0x72   :  { %1175 = vmatpush3.bf16.msra.mxu1 %v1278_v18 }
  0x73   :  { %1145 = vmatpush3.bf16.msra.mxu0 %v1258_v9  ;;  %1176 = vmatprep.subr.bf16.mxu1 %v1280_v20 }
  0x74   :  { %1146 = vmatprep.subr.bf16.mxu0 %v1259_v11 }
  0x76   :  { %1177 = vmatpush3.bf16.msra.mxu1 %v1280_v20 }
  0x77   :  { %1147 = vmatpush3.bf16.msra.mxu0 %v1259_v11  ;;  %1178 = vmatprep.subr.bf16.mxu1 %v1282_v30 }
  0x78   :  { %1196 = vmatprep.subr.bf16.mxu0 %v1569_v13 }
  0x7a   :  { %1149 = vmatmul.mubr.bf16.vlgmr.msra.gmra.mrb[0].mxu0 %v1261_v14  ;;  %1179 = vmatpush3.bf16.msra.mxu1 %v1282_v30 }
  0x7b   :  { %1152 = vmatprep.mubr.bf16.mxu0 %v1262_v16  ;;  %1197 = vmatpush3.bf16.msra.mxu0 %v1569_v13 }
  0x7c   :  { %1198 = vmatprep.subr.bf16.mxu0 %v1571_v17  ;;  %1228 = vmatprep.subr.bf16.mxu1 %v1569_v13 }
  0x7f   :  { %1199 = vmatpush3.bf16.msra.mxu0 %v1571_v17 }
  0x80   :  { %1200 = vmatprep.subr.bf16.mxu0 %v1576_v19 }
  0x82   :  { %1153 = vmatmul.mubr.bf16.gmra.mrb[4].mxu0 %v1263_v21 }
  0x83   :  { %1156 = vmatprep.mubr.bf16.mxu0 %v1264_v22  ;;  %1201 = vmatpush3.bf16.msra.mxu0 %v1576_v19 }
  0x84   :  { %1202 = vmatprep.subr.bf16.mxu0 %v1580_v23 }
  0x87   :  { %1203 = vmatpush3.bf16.msra.mxu0 %v1580_v23 }
  0x88   :  { %1204 = vmatprep.subr.bf16.mxu0 %v1584_v24 }
  0x8a   :  { %1157 = vmatmul.mubr.bf16.gmra.mrb[8].mxu0 %v1265_v25 }
  0x8b   :  { %1160 = vmatprep.mubr.bf16.mxu0 %v1266_v26  ;;  %1205 = vmatpush3.bf16.msra.mxu0 %v1584_v24 }
  0x8c   :  { %1206 = vmatprep.subr.bf16.mxu0 %v1588_v27 }
  0x8f   :  { %1207 = vmatpush3.bf16.msra.mxu0 %v1588_v27 }
  0x90   :  { %1208 = vmatprep.subr.bf16.mxu0 %v1592_v28 }
  0x92   :  { %1161 = vmatmul.mubr.bf16.gmra.mrb[12].mxu0 %v1267_v29 }
  0x93   :  { %1209 = vmatpush3.bf16.msra.mxu0 %v1592_v28  ;;  %1212 = vmatprep.mubr.bf16.mxu0 %v1284_v32 }
  0x94   :  { %1210 = vmatprep.subr.bf16.mxu0 %v1283_v31 }
  0x97   :  { %1211 = vmatpush3.bf16.msra.mxu0 %v1283_v31 }
  0x9a   :  { %1213 = vmatmul.mubr.bf16.vlgmr.msra.gmra.mrb[16].mxu0 %v1285_v33 }
  0x9b   :  { %1216 = vmatprep.mubr.bf16.mxu0 %v1286_v34 }
  0xa2   :  { %1217 = vmatmul.mubr.bf16.gmra.mrb[20].mxu0 %v1287_v35 }
 0x14d   :  { %v1150_v36 = vpop.f32.mrb[0].mxu0 }
 0x14e   :  { %v294_v37 = vpop.f32.mrb[1].mxu0 }
 0x14f   :  { %v1151_v38 = vpop.f32.mrb[2].mxu0 }
 0x150   :  { %v409_v39 = vpack.c.bf16 %v1151_v38, %v1150_v36  ;;  %v297_v40 = vpop.f32.mrb[3].mxu0 }
 0x151   :  { %v408_v41 = vpack.c.bf16 %v297_v40, %v294_v37 }
 0x153   :  { %1180 = vmatprep.mubr.bf16.mxu1 %v408_v41 }
 0x154   :  { %1181 = vmatmul.mubr.bf16.vlgmr.msra.gmra.mrb[0].mxu1 %v409_v39 }
 0x155   :  { %1236 = vmatpush3.bf16.msra.mxu1 %v1569_v13  ;;  %v1154_v42 = vpop.f32.mrb[4].mxu0 }
 0x156   :  { %v310_v43 = vpop.f32.mrb[5].mxu0  ;;  %1229 = vmatprep.subr.bf16.mxu1 %v1571_v17 }
 0x157   :  { %v1155_v44 = vpop.f32.mrb[6].mxu0 }
 0x158   :  { %v411_v45 = vpack.c.bf16 %v1155_v44, %v1154_v42  ;;  %v313_v46 = vpop.f32.mrb[7].mxu0 }
 0x159   :  { %v410_v47 = vpack.c.bf16 %v313_v46, %v310_v43  ;;  %1237 = vmatpush3.bf16.msra.mxu1 %v1571_v17 }
 0x15a   :  { %1230 = vmatprep.subr.bf16.mxu1 %v1576_v19 }
 0x15b   :  { %1184 = vmatprep.mubr.bf16.mxu1 %v410_v47 }
 0x15c   :  { %1185 = vmatmul.mubr.bf16.gmra.mrb[4].mxu1 %v411_v45 }
 0x15d   :  { %1238 = vmatpush3.bf16.msra.mxu1 %v1576_v19  ;;  %v1158_v48 = vpop.f32.mrb[8].mxu0 }
 0x15e   :  { %v326_v49 = vpop.f32.mrb[9].mxu0  ;;  %1231 = vmatprep.subr.bf16.mxu1 %v1580_v23 }
 0x15f   :  { %v1159_v50 = vpop.f32.mrb[10].mxu0 }
 0x160   :  { %v413_v51 = vpack.c.bf16 %v1159_v50, %v1158_v48  ;;  %v329_v52 = vpop.f32.mrb[11].mxu0 }
 0x161   :  { %v412_v53 = vpack.c.bf16 %v329_v52, %v326_v49  ;;  %1239 = vmatpush3.bf16.msra.mxu1 %v1580_v23 }
 0x162   :  { %1232 = vmatprep.subr.bf16.mxu1 %v1584_v24 }
 0x163   :  { %1188 = vmatprep.mubr.bf16.mxu1 %v412_v53 }
 0x164   :  { %1189 = vmatmul.mubr.bf16.gmra.mrb[8].mxu1 %v413_v51 }
 0x165   :  { %1240 = vmatpush3.bf16.msra.mxu1 %v1584_v24  ;;  %v1162_v54 = vpop.f32.mrb[12].mxu0 }
 0x166   :  { %v342_v55 = vpop.f32.mrb[13].mxu0  ;;  %1233 = vmatprep.subr.bf16.mxu1 %v1588_v27 }
 0x167   :  { %v1163_v56 = vpop.f32.mrb[14].mxu0 }
 0x168   :  { %v415_v57 = vpack.c.bf16 %v1163_v56, %v1162_v54  ;;  %v345_v58 = vpop.f32.mrb[15].mxu0 }
 0x169   :  { %v414_v59 = vpack.c.bf16 %v345_v58, %v342_v55  ;;  %1241 = vmatpush3.bf16.msra.mxu1 %v1588_v27 }
 0x16a   :  { %1234 = vmatprep.subr.bf16.mxu1 %v1592_v28 }
 0x16b   :  { %1192 = vmatprep.mubr.bf16.mxu1 %v414_v59 }
 0x16c   :  { %1193 = vmatmul.mubr.bf16.gmra.mrb[12].mxu1 %v415_v57 }
 0x16d   :  { %1242 = vmatpush3.bf16.msra.mxu1 %v1592_v28  ;;  %1220 = vmatprep.mubr.bf16.mxu1 %v1288_v60  ;;  %v1214_v0 = vpop.f32.mrb[16].mxu0 }
 0x16e   :  { %1235 = vmatprep.subr.bf16.mxu1 %v1283_v31  ;;  %v769_v1 = vpop.f32.mrb[17].mxu0  ;;  %v778_v9 = vadd.f32 %v1214_v0, %v1614_v8 }
 0x16f   :  { %v1215_v2 = vpop.f32.mrb[18].mxu0  ;;  %v770_v11 = vadd.f32 %v1614_v8, %v769_v1 }
 0x170   :  { %v772_v3 = vpop.f32.mrb[19].mxu0  ;;  %v781_v12 = vadd.f32 %v1215_v2, %v1614_v8  ;;  %v834_v16 = vmax.f32 %v778_v9, 0.0 }
 0x171   :  { %1243 = vmatpush3.bf16.msra.mxu1 %v1283_v31  ;;  %v773_v14 = vadd.f32 %v1614_v8, %v772_v3  ;;  %v832_v19 = vmax.f32 %v770_v11, 0.0 }
 0x172   :  { %v835_v23 = vmax.f32 %v781_v12, 0.0 }
 0x173   :  { %v833_v27 = vmax.f32 %v773_v14, 0.0 }
 0x174   :  { %1221 = vmatmul.mubr.bf16.vlgmr.msra.gmra.mrb[16].mxu1 %v1289_v61 }
 0x175   :  { %1224 = vmatprep.mubr.bf16.mxu1 %v1290_v62  ;;  %v1218_v4 = vpop.f32.mrb[20].mxu0 }
 0x176   :  { %v785_v5 = vpop.f32.mrb[21].mxu0  ;;  %v794_v30 = vadd.f32 %v1218_v4, %v1614_v8 }
 0x177   :  { %v1219_v6 = vpop.f32.mrb[22].mxu0  ;;  %v786_v33 = vadd.f32 %v1614_v8, %v785_v5 }
 0x178   :  { %v788_v7 = vpop.f32.mrb[23].mxu0  ;;  %v797_v35 = vadd.f32 %v1219_v6, %v1614_v8  ;;  %v838_v41 = vmax.f32 %v794_v30, 0.0 }
 0x179   :  { %v789_v38 = vadd.f32 %v1614_v8, %v788_v7  ;;  %v836_v45 = vmax.f32 %v786_v33, 0.0 }
 0x17a   :  { %v839_v49 = vmax.f32 %v797_v35, 0.0 }
 0x17b   :  { %v837_v53 = vmax.f32 %v789_v38, 0.0 }
 0x17c   :  { %1225 = vmatmul.mubr.bf16.gmra.mrb[20].mxu1 %v1291_v63 }
 0x227   :  { %v1182_v13 = vpop.f32.mrb[0].mxu1 }
 0x228   :  { %v530_v15 = vadd.f32 %v1182_v13, %v1620_v10  ;;  %v521_v17 = vpop.f32.mrb[1].mxu1 }
 0x229   :  { %v522_v18 = vadd.f32 %v1620_v10, %v521_v17  ;;  %v1183_v20 = vpop.f32.mrb[2].mxu1 }
 0x22a   :  { %v586_v21 = vmax.f32 %v530_v15, 0.0  ;;  %v533_v22 = vadd.f32 %v1183_v20, %v1620_v10  ;;  %v524_v24 = vpop.f32.mrb[3].mxu1 }
 0x22b   :  { %v584_v25 = vmax.f32 %v522_v18, 0.0  ;;  %v525_v26 = vadd.f32 %v1620_v10, %v524_v24 }
 0x22c   :  { %v850_v28 = vadd.f32 %v834_v16, %v586_v21  ;;  %v587_v29 = vmax.f32 %v533_v22, 0.0 }
 0x22d   :  { %v848_v31 = vadd.f32 %v832_v19, %v584_v25  ;;  %v585_v32 = vmax.f32 %v525_v26, 0.0 }
 0x22e   :  { %v851_v34 = vadd.f32 %v835_v23, %v587_v29 }
 0x22f   :  { %v849_v36 = vadd.f32 %v833_v27, %v585_v32  ;;  %v1186_v37 = vpop.f32.mrb[4].mxu1 }
 0x230   :  { %v1045_v39 = vpack.c.bf16 %v851_v34, %v850_v28  ;;  %v546_v40 = vadd.f32 %v1186_v37, %v1620_v10  ;;  %v537_v42 = vpop.f32.mrb[5].mxu1 }
 0x231   :  { %v1040_v43 = vpack.c.bf16 %v849_v36, %v848_v31  ;;  %v538_v44 = vadd.f32 %v1620_v10, %v537_v42  ;;  %v1187_v46 = vpop.f32.mrb[6].mxu1 }
 0x232   :  { %1077 = vst [vmem:[#allocation12 + $0x8] sm:$0xff] %v1045_v39   ;;  %v590_v47 = vmax.f32 %v546_v40, 0.0  ;;  %v549_v48 = vadd.f32 %v1187_v46, %v1620_v10  ;;  %v540_v50 = vpop.f32.mrb[7].mxu1 }
 0x233   :  { %1041 = vst [vmem:[#allocation12] sm:$0xff] %v1040_v43   ;;  %v588_v51 = vmax.f32 %v538_v44, 0.0  ;;  %v541_v52 = vadd.f32 %v1620_v10, %v540_v50 }
 0x234   :  { %v854_v54 = vadd.f32 %v838_v41, %v590_v47  ;;  %v591_v55 = vmax.f32 %v549_v48, 0.0 }
 0x235   :  { %v852_v56 = vadd.f32 %v836_v45, %v588_v51  ;;  %v589_v57 = vmax.f32 %v541_v52, 0.0 }
 0x236   :  { %v855_v58 = vadd.f32 %v839_v49, %v591_v55 }
 0x237   :  { %v853_v59 = vadd.f32 %v837_v53, %v589_v57  ;;  %v1190_v60 = vpop.f32.mrb[8].mxu1 }
 0x238   :  { %v1055_v61 = vpack.c.bf16 %v855_v58, %v854_v54  ;;  %v553_v62 = vpop.f32.mrb[9].mxu1  ;;  %v562_v6 = vadd.f32 %v1190_v60, %v1620_v10 }
 0x239   :  { %v1050_v63 = vpack.c.bf16 %v853_v59, %v852_v56  ;;  %v1191_v0 = vpop.f32.mrb[10].mxu1  ;;  %v554_v7 = vadd.f32 %v1620_v10, %v553_v62 }
 0x23a   :  { %1079 = vst [vmem:[#allocation12 + $0x18] sm:$0xff] %v1055_v61   ;;  %v556_v1 = vpop.f32.mrb[11].mxu1  ;;  %v565_v11 = vadd.f32 %v1191_v0, %v1620_v10  ;;  %v594_v17 = vmax.f32 %v562_v6, 0.0 }
 0x23b   :  { %1078 = vst [vmem:[#allocation12 + $0x10] sm:$0xff] %v1050_v63   ;;  %v557_v14 = vadd.f32 %v1620_v10, %v556_v1  ;;  %v592_v21 = vmax.f32 %v554_v7, 0.0 }
 0x23c   :  { %v595_v24 = vmax.f32 %v565_v11, 0.0 }
 0x23d   :  { %v593_v27 = vmax.f32 %v557_v14, 0.0 }
 0x23f   :  { %v1194_v2 = vpop.f32.mrb[12].mxu1 }
 0x240   :  { %v569_v3 = vpop.f32.mrb[13].mxu1  ;;  %v578_v30 = vadd.f32 %v1194_v2, %v1620_v10 }
 0x241   :  { %v1195_v4 = vpop.f32.mrb[14].mxu1  ;;  %v570_v32 = vadd.f32 %v1620_v10, %v569_v3 }
 0x242   :  { %v572_v5 = vpop.f32.mrb[15].mxu1  ;;  %v581_v35 = vadd.f32 %v1195_v4, %v1620_v10  ;;  %v598_v43 = vmax.f32 %v578_v30, 0.0 }
 0x243   :  { %v573_v39 = vadd.f32 %v1620_v10, %v572_v5  ;;  %v596_v47 = vmax.f32 %v570_v32, 0.0 }
 0x244   :  { %v599_v50 = vmax.f32 %v581_v35, 0.0 }
 0x245   :  { %v597_v53 = vmax.f32 %v573_v39, 0.0 }
 0x247   :  { %v1222_v9 = vpop.f32.mrb[16].mxu1 }
 0x248   :  { %v810_v12 = vadd.f32 %v1222_v9, %v1614_v8  ;;  %v801_v13 = vpop.f32.mrb[17].mxu1 }
 0x249   :  { %v802_v15 = vadd.f32 %v1614_v8, %v801_v13  ;;  %v1223_v16 = vpop.f32.mrb[18].mxu1 }
 0x24a   :  { %v842_v18 = vmax.f32 %v810_v12, 0.0  ;;  %v813_v19 = vadd.f32 %v1223_v16, %v1614_v8  ;;  %v804_v20 = vpop.f32.mrb[19].mxu1 }
 0x24b   :  { %v840_v22 = vmax.f32 %v802_v15, 0.0  ;;  %v805_v23 = vadd.f32 %v1614_v8, %v804_v20 }
 0x24c   :  { %v858_v25 = vadd.f32 %v842_v18, %v594_v17  ;;  %v843_v26 = vmax.f32 %v813_v19, 0.0 }
 0x24d   :  { %v856_v28 = vadd.f32 %v840_v22, %v592_v21  ;;  %v841_v29 = vmax.f32 %v805_v23, 0.0 }
 0x24e   :  { %v859_v31 = vadd.f32 %v843_v26, %v595_v24 }
 0x24f   :  { %v857_v33 = vadd.f32 %v841_v29, %v593_v27  ;;  %v1226_v34 = vpop.f32.mrb[20].mxu1 }
 0x250   :  { %v1065_v36 = vpack.c.bf16 %v859_v31, %v858_v25  ;;  %v826_v37 = vadd.f32 %v1226_v34, %v1614_v8  ;;  %v817_v38 = vpop.f32.mrb[21].mxu1 }
 0x251   :  { %v1060_v40 = vpack.c.bf16 %v857_v33, %v856_v28  ;;  %v818_v41 = vadd.f32 %v1614_v8, %v817_v38  ;;  %v1227_v42 = vpop.f32.mrb[22].mxu1 }
 0x252   :  { %1081 = vst [vmem:[#allocation12 + $0x28] sm:$0xff] %v1065_v36   ;;  %v846_v44 = vmax.f32 %v826_v37, 0.0  ;;  %v829_v45 = vadd.f32 %v1227_v42, %v1614_v8  ;;  %v820_v46 = vpop.f32.mrb[23].mxu1 }
 0x253   :  { %1080 = vst [vmem:[#allocation12 + $0x20] sm:$0xff] %v1060_v40   ;;  %v844_v48 = vmax.f32 %v818_v41, 0.0  ;;  %v821_v49 = vadd.f32 %v1614_v8, %v820_v46 }
 0x254   :  { %v862_v51 = vadd.f32 %v846_v44, %v598_v43  ;;  %v847_v52 = vmax.f32 %v829_v45, 0.0 }
 0x255   :  { %v860_v10 = vadd.f32 %v844_v48, %v596_v47  ;;  %v845_v54 = vmax.f32 %v821_v49, 0.0 }
 0x256   :  { %v863_v55 = vadd.f32 %v847_v52, %v599_v50 }
 0x257   :  { %v861_v56 = vadd.f32 %v845_v54, %v597_v53 }
 0x258   :  { %v1075_v57 = vpack.c.bf16 %v863_v55, %v862_v51 }
 0x259   :  { %v1070_v58 = vpack.c.bf16 %v861_v56, %v860_v10 }
 0x25a   :  { %1083 = vst [vmem:[#allocation12 + $0x38] sm:$0xff] %v1075_v57  }
 0x25b   :  { %1082 = vst [vmem:[#allocation12 + $0x30] sm:$0xff] %v1070_v58  }
 0x25c   :  { %1413 = shalt.err (!%p1410_p2)
}
 0x25d   :  { %s1414_s21 = scalar_lea.hbm %s1675_s7, 1024 }
 0x25e   :  { %p1415_p3 = scmp.ne.s32.totalorder %s1675_s7, %s1414_s21  ;;  %p1418_p4 = scmp.lt.u32.totalorder %s1414_s21, %s1675_s7 }
 0x260   :  { %p1420_p5 = pnand %p1418_p4, %p1415_p3 }
 0x262   :  { %1423 = shalt.err (!%p1420_p5)
}
 0x263   :  { %955 = dma.vmem_to_hbm [thread:$0]  %s950_s6, 1024, %s1675_s7, [#allocation5], %s1434_s13, %s1434_s13, %s1435_s14  }
 0x264   :  { %1430 = dma.done.wait [#allocation5], 1024  }
 0x265   :  { %1431 = vsyncadd [#allocation5], 4294966272 }
 0x266   :  { %959 = vsyncpa [#allocation4], 1 }
 0x267   :  { %960 = vsyncpa [#allocation7], 1 }
 0x268   :  { %961 = vsyncpa [#allocation10], 1 }
 0x269   :  { %962 = vsyncpa [#allocation5], 1 }

</bundles_post_ra>
